<compile_context>
chip_gen: v5e
topology: v5e:2x2
jax: 0.10.0
libtpu: 0.0.40
codegen_flags: <defaults>
</compile_context>

<pallas_src>
import functools

import jax
import jax.numpy as jnp
from jax import lax
from jax.experimental import pallas as pl
from jax.experimental.pallas import tpu as pltpu

FEATURE_DIM = 32
BATCH = 8


# ------------------------------ Pallas kernel -------------------------------

def _goal_encoder_kernel(x_ref, wt_ref, b_ref, o_ref):
    # x: (tm, 2), wt: (2, F), b: (1, F), o: (tm, F)
    x = x_ref[...]
    wt = wt_ref[...]
    # Linear(2, F) + ReLU.  Contraction dim is 2 -> two broadcast FMAs on the
    # VPU (lane-broadcast of each input column against a weight row), which is
    # cheaper than driving the MXU for a K=2 matmul.
    y = x[:, 0:1] * wt[0:1, :] + x[:, 1:2] * wt[1:2, :] + b_ref[...]
    o_ref[...] = jnp.maximum(y, 0.0)


# ------------------------------ wrapper (fwd) -------------------------------

@functools.partial(jax.jit, static_argnames=("block_n",))
def goal_encoder_forward(x, w, b, *, block_n=512):
    """GoalEncoder forward.

    x: (N, 2) float32, w: (feature_dim, 2) torch Linear layout, b: (feature_dim,)
    Returns relu(x @ w.T + b), shape (N, feature_dim).
    """
    n = x.shape[0]
    f = w.shape[0]
    wt = w.T                       # (2, F)   lane-dense
    b2 = b.reshape(1, f)           # (1, F)

    if n <= block_n:
        # Grid-less: the whole problem fits trivially in VMEM.
        return pl.pallas_call(
            _goal_encoder_kernel,
            out_shape=jax.ShapeDtypeStruct((n, f), jnp.float32),
            in_specs=[pl.BlockSpec(memory_space=pltpu.MemorySpace.VMEM)] * 3,
            out_specs=pl.BlockSpec(memory_space=pltpu.MemorySpace.VMEM),
        )(x, wt, b2)

    # Row-tiled, auto-pipelined path for large batches; weight/bias blocks are
    # the same for every grid step (resident), rows stream through VMEM.
    return pl.pallas_call(
        _goal_encoder_kernel,
        out_shape=jax.ShapeDtypeStruct((n, f), jnp.float32),
        grid_spec=pltpu.PrefetchScalarGridSpec(
            num_scalar_prefetch=0,
            grid=(pl.cdiv(n, block_n),),
            in_specs=[
                pl.BlockSpec((block_n, 2), lambda i: (i, 0)),
                pl.BlockSpec((2, f), lambda i: (0, 0)),
                pl.BlockSpec((1, f), lambda i: (0, 0)),
            ],
            out_specs=pl.BlockSpec((block_n, f), lambda i: (i, 0)),
        ),
        compiler_params=pltpu.CompilerParams(
            dimension_semantics=("parallel",)),
    )(x, wt, b2)


# ----------------------------- pure-JAX reference ---------------------------

def ref_forward(x, w, b):
    y = jnp.dot(x, w.T, precision=lax.Precision.HIGHEST) + b
    return jnp.maximum(y, 0.0)


# ----------------------------------- main -----------------------------------

if __name__ == "__main__":
    key = jax.random.PRNGKey(0)
    k_w, k_b, k_x, k_x2 = jax.random.split(key, 4)

    w = 0.5 * jax.random.normal(k_w, (FEATURE_DIM, 2), jnp.float32)
    b = 0.1 * jax.random.normal(k_b, (FEATURE_DIM,), jnp.float32)

    # Small batch -> grid-less path.
    x = jax.random.normal(k_x, (BATCH, 2), jnp.float32)
    out = jax.block_until_ready(goal_encoder_forward(x, w, b))
    ref = ref_forward(x, w, b)
    assert out.shape == (BATCH, FEATURE_DIM), out.shape
    assert jnp.allclose(out, ref, rtol=1e-5, atol=1e-5), \
        float(jnp.max(jnp.abs(out - ref)))

    # Larger batch -> row-tiled pipelined path.
    x2 = jax.random.normal(k_x2, (1024, 2), jnp.float32)
    out2 = jax.block_until_ready(goal_encoder_forward(x2, w, b))
    ref2 = ref_forward(x2, w, b)
    assert out2.shape == (1024, FEATURE_DIM), out2.shape
    assert jnp.allclose(out2, ref2, rtol=1e-5, atol=1e-5), \
        float(jnp.max(jnp.abs(out2 - ref2)))

    print("KERNEL_OK")
</pallas_src>

<mosaic_0001>
module attributes {stable_mosaic.version = 11 : i64} {
  func.func @_goal_encoder_kernel(%arg0: memref<8x2xf32, #tpu.memory_space<vmem>>, %arg1: memref<2x32xf32, #tpu.memory_space<vmem>>, %arg2: memref<1x32xf32, #tpu.memory_space<vmem>>, %arg3: memref<8x32xf32, #tpu.memory_space<vmem>>) attributes {dimension_semantics = [], scalar_prefetch = 0 : i64, scratch_operands = 0 : i64, tpu.core_type = #tpu.core_type<tc>} {
    %c0 = arith.constant 0 : index
    %c0_0 = arith.constant 0 : index
    %0 = vector.load %arg0[%c0, %c0_0] : memref<8x2xf32, #tpu.memory_space<vmem>>, vector<8x2xf32>
    %c0_1 = arith.constant 0 : index
    %c0_2 = arith.constant 0 : index
    %1 = vector.load %arg1[%c0_1, %c0_2] : memref<2x32xf32, #tpu.memory_space<vmem>>, vector<2x32xf32>
    %2 = vector.extract_strided_slice %0 {offsets = [0, 0], sizes = [8, 1], strides = [1, 1]} : vector<8x2xf32> to vector<8x1xf32>
    %3 = vector.extract_strided_slice %1 {offsets = [0, 0], sizes = [1, 32], strides = [1, 1]} : vector<2x32xf32> to vector<1x32xf32>
    %4 = vector.broadcast %2 : vector<8x1xf32> to vector<8x32xf32>
    %5 = vector.broadcast %3 : vector<1x32xf32> to vector<8x32xf32>
    %6 = arith.mulf %4, %5 : vector<8x32xf32>
    %7 = vector.extract_strided_slice %0 {offsets = [0, 1], sizes = [8, 1], strides = [1, 1]} : vector<8x2xf32> to vector<8x1xf32>
    %8 = vector.extract_strided_slice %1 {offsets = [1, 0], sizes = [1, 32], strides = [1, 1]} : vector<2x32xf32> to vector<1x32xf32>
    %9 = vector.broadcast %7 : vector<8x1xf32> to vector<8x32xf32>
    %10 = vector.broadcast %8 : vector<1x32xf32> to vector<8x32xf32>
    %11 = arith.mulf %9, %10 : vector<8x32xf32>
    %12 = arith.addf %6, %11 : vector<8x32xf32>
    %c0_3 = arith.constant 0 : index
    %c0_4 = arith.constant 0 : index
    %13 = vector.load %arg2[%c0_3, %c0_4] : memref<1x32xf32, #tpu.memory_space<vmem>>, vector<1x32xf32>
    %14 = vector.broadcast %13 : vector<1x32xf32> to vector<8x32xf32>
    %15 = arith.addf %12, %14 : vector<8x32xf32>
    %cst = arith.constant 0.000000e+00 : f32
    %16 = vector.broadcast %cst : f32 to vector<8x32xf32>
    %17 = arith.maximumf %15, %16 : vector<8x32xf32>
    %c0_5 = arith.constant 0 : index
    %c0_6 = arith.constant 0 : index
    %18 = vector.load %arg3[%c0_5, %c0_6] : memref<8x32xf32, #tpu.memory_space<vmem>>, vector<8x32xf32>
    tpu.vector_store %arg3[%c0_5, %c0_6], %17 {strides = array<i32>} : memref<8x32xf32, #tpu.memory_space<vmem>>, vector<8x32xf32>,
    return
  }
}

</mosaic_0001>

<bundles_post_ra>
// kernel: goal_encoder_forward.1
= control target key start
LH: loop header
LB: loop body
LE: loop exit
PB: predicated region body
PF: predicated region fallthrough
CT: control target
= control target key end

     0   :  { %v87_v1 = vmov 0   ;;  %s122_s0 = inlined_call_operand.vmem [shape: f32[8,2], index: 0, kind: input, shape index: {}]   ;;  %s123_s1 = inlined_call_operand.vmem [shape: f32[2,32], index: 1, kind: input, shape index: {}]   ;;  %s124_s2 = inlined_call_operand.vmem [shape: f32[1,32], index: 2, kind: input, shape index: {}]   ;;  %s125_s3 = inlined_call_operand.hbm [shape: f32[8,32], index: 3, kind: output, shape index: {}]  }
   0x1   :  { %v15_v0 = vld [vmem:[%s122_s0] sm:$0xff]  ;;  %58 = vset.pattern.permute.xlu0 %v87_v1 }
   0x2   :  { %8 = vsyncpa [#allocation3], 0  ;;  %19 = vperm.xlu0 %58, %v15_v0   ;;  %v88_v2 = vmov 1   ;;  %v16_v4 = vld [vmem:[%s123_s1] sm:$0x3]  ;;  %s89_s0 = smov [#allocation2]  }
   0x3   :  { %v22_v5 = vperm.slane %v16_v4, 0  ;;  %v28_v6 = vperm.slane %v16_v4, 1  ;;  %v60_v9 = vld [vmem:[%s124_s2] ss:$0 sm:$0xff]  ;;  %s44_s18 = sshll.u32 %s89_s0, 4  ;;  %s46_s21 = sshll.u32 %s125_s3, 4  ;;  %s45_s18 = int_to_ptr.vmem [resolvable:$true] %s44_s18  ;;  %s47_s21 = int_to_ptr.hbm [resolvable:$true] %s46_s21 }
   0x4   :  { %vm37_vm0 = vcmask 261120  }
   0xa   :  { %59 = vset.pattern.permute.xlu0 %v88_v2 }
   0xb   :  { %25 = vperm.xlu0 %59, %v15_v0  }
  0x74   :  { %v20_v3 = vpop.permute.xlu0 %19 }
  0x75   :  { %v23_v8 = vmul.f32 %v22_v5, %v20_v3 }
  0x7d   :  { %v26_v7 = vpop.permute.xlu0 %25 }
  0x7e   :  { %v29_v10 = vmul.f32 %v28_v6, %v26_v7 }
  0x80   :  { %v30_v11 = vadd.f32 %v29_v10, %v23_v8 }
  0x82   :  { %v35_v12 = vadd.f32 %v60_v9, %v30_v11 }
  0x84   :  { %v36_v13 = vmax.f32 %v35_v12, 0.0 }
  0x86   :  { %38 = vst.msk [vmem:[#allocation2] sm:$0xff] %vm37_vm0, %v36_v13 }
  0x87   :  { %49 = dma.vmem_to_hbm [thread:$0]  %s45_s18, 128, %s47_s21, [#allocation3]  }
  0x88   :  { %85 = dma.done.wait [#allocation3], 128  }
  0x89   :  { %86 = vsyncadd [#allocation3], 4294967168 }
  0x8a   :  { %54 = vsyncpa [#allocation3], 1 }

</bundles_post_ra>
